<compile_context>
chip_gen: v7x
topology: tpu7x:2x2x1
jax: 0.10.0
libtpu: 0.0.40
codegen_flags: <defaults>
</compile_context>

<pallas_src>
import functools
import math

import jax
import jax.numpy as jnp
from jax.experimental import pallas as pl
from jax.experimental.pallas import tpu as pltpu


def _round_up(a, b):
    return ((a + b - 1) // b) * b


# ---------------------------------------------------------------------------
# Kernel: y = act((x @ w) * scale + shift)
# ---------------------------------------------------------------------------
def _fc_act_kernel(x_ref, w_ref, scale_ref, shift_ref, o_ref, *, activation):
    # x_ref: (bm, Cin) bf16   w_ref: (Cin, Cout) bf16   scale/shift: (1, Cout) f32
    y = jnp.dot(x_ref[...], w_ref[...], preferred_element_type=jnp.float32)
    y = y * scale_ref[...] + shift_ref[...]          # bias / BN(eval) folded on host
    if activation == "sigmoid":
        y = jax.nn.sigmoid(y)
    elif activation == "softmax":
        y = jax.nn.softmax(y, axis=-1)
    elif activation == "relu":
        y = jnp.maximum(y, 0.0)
    # activation == "global" (or None): identity
    o_ref[...] = y


def fc_act(x2, w_io, scale, shift, *, activation, block_m=512):
    # x2: (M, Cin) bf16, M already padded to the tile size; w_io: (Cin, Cout) bf16
    M, cin = x2.shape
    cout = w_io.shape[-1]
    bm = M if M <= block_m else block_m
    assert M % bm == 0
    kernel = functools.partial(_fc_act_kernel, activation=activation)
    return pl.pallas_call(
        kernel,
        out_shape=jax.ShapeDtypeStruct((M, cout), jnp.float32),
        grid=(M // bm,),
        in_specs=[
            pl.BlockSpec((bm, cin), lambda i: (i, 0)),
            pl.BlockSpec((cin, cout), lambda i: (0, 0)),
            pl.BlockSpec((1, cout), lambda i: (0, 0)),
            pl.BlockSpec((1, cout), lambda i: (0, 0)),
        ],
        out_specs=pl.BlockSpec((bm, cout), lambda i: (i, 0)),
        compiler_params=pltpu.CompilerParams(
            dimension_semantics=("parallel",)),      # shards row tiles across v7x's 2 TCs
    )(x2, w_io, scale, shift)


# ---------------------------------------------------------------------------
# Parameter init (mirrors FullyConnected.__init__ / init_weights, eval-mode BN)
# ---------------------------------------------------------------------------
def init_params(key, in_channels, out_channels, *, activation, normalisation=None, att=None):
    if activation in ("sigmoid", "softmax", "global"):
        normalisation = None                                     # module forces norm=None

    if att:
        w = jnp.ones((out_channels, in_channels), jnp.float32)   # init_att_layer
    else:
        scale_w = math.sqrt(2.0 / in_channels) * math.sqrt(3.0)  # init_layer (He-uniform)
        w = jax.random.uniform(key, (out_channels, in_channels), jnp.float32,
                               -scale_w, scale_w)
    b = jnp.zeros((out_channels,), jnp.float32)                  # init_layer / init_att_layer

    if normalisation == "bn":
        # fresh BatchNorm1d in eval mode: gamma=1, beta=0, running_mean=0, running_var=1
        gamma = jnp.ones((out_channels,), jnp.float32)
        beta = jnp.zeros((out_channels,), jnp.float32)
        mean = jnp.zeros((out_channels,), jnp.float32)
        var = jnp.ones((out_channels,), jnp.float32)
        eps = 1e-5
        bn_scale = gamma / jnp.sqrt(var + eps)
        scale = bn_scale
        shift = (b - mean) * bn_scale + beta
    else:
        # TODO(synk): normalisation == 'wn' (nn.utils.weight_norm) reparam is not folded here.
        scale = jnp.ones((out_channels,), jnp.float32)
        shift = b

    return dict(
        w_io=jnp.transpose(w).astype(jnp.bfloat16),   # (Cin, Cout): lane-dense output features
        scale=scale[None, :],
        shift=shift[None, :],
        w_ref=w, b_ref=b,                             # f32 copies for the reference check
    )


# ---------------------------------------------------------------------------
# Forward pass (eval-mode semantics of FullyConnected.forward)
# ---------------------------------------------------------------------------
def fully_connected_forward(x, params, *, activation, block_m=512):
    # x: (..., in_channels)
    lead = x.shape[:-1]
    cin = x.shape[-1]
    M = int(math.prod(lead)) if lead else 1
    x2 = x.reshape(M, cin)

    # Pad rows so the grid tiles evenly (padded rows are discarded; softmax is per-row).
    Mp = _round_up(M, 8) if M <= block_m else _round_up(M, block_m)
    if Mp != M:
        x2 = jnp.pad(x2, ((0, Mp - M), (0, 0)))

    out = fc_act(x2.astype(jnp.bfloat16), params["w_io"], params["scale"], params["shift"],
                 activation=activation, block_m=block_m)
    out = out[:M]
    return out.reshape(lead + (out.shape[-1],))


if __name__ == "__main__":
    key = jax.random.PRNGKey(0)
    k_p1, k_p2, k_x1, k_x2 = jax.random.split(key, 4)

    # Config 1: the typical classifier head -- Linear(128 -> 1) + Sigmoid
    B, Cin, Cout = 8, 128, 1
    p1 = init_params(k_p1, Cin, Cout, activation="sigmoid")
    x1 = jax.random.normal(k_x1, (B, Cin), jnp.float32)
    y1 = jax.block_until_ready(fully_connected_forward(x1, p1, activation="sigmoid"))
    ref1 = jax.nn.sigmoid(x1 @ p1["w_ref"].T + p1["b_ref"])
    assert y1.shape == (B, Cout)
    assert bool(jnp.all(jnp.isfinite(y1)))
    assert bool(jnp.all((y1 >= 0.0) & (y1 <= 1.0)))
    assert bool(jnp.max(jnp.abs(y1 - ref1)) < 5e-2)   # bf16 matmul-operand tolerance

    # Config 2: Linear(32 -> 32) + BatchNorm1d(eval) + ReLU
    B2, Cin2, Cout2 = 2, 32, 32
    p2 = init_params(k_p2, Cin2, Cout2, activation="relu", normalisation="bn")
    x2 = jax.random.normal(k_x2, (B2, Cin2), jnp.float32)
    y2 = jax.block_until_ready(fully_connected_forward(x2, p2, activation="relu"))
    ref2 = jnp.maximum((x2 @ p2["w_ref"].T + p2["b_ref"]) / jnp.sqrt(1.0 + 1e-5), 0.0)
    assert y2.shape == (B2, Cout2)
    assert bool(jnp.all(jnp.isfinite(y2)))
    assert bool(jnp.all(y2 >= 0.0))
    assert bool(jnp.max(jnp.abs(y2 - ref2)) < 5e-2)

    print("KERNEL_OK")
</pallas_src>

<mosaic_0001>
module attributes {stable_mosaic.version = 11 : i64} {
  func.func @_fc_act_kernel(%arg0: i32, %arg1: memref<8x128xbf16, #tpu.memory_space<vmem>>, %arg2: memref<128x1xbf16, #tpu.memory_space<vmem>>, %arg3: memref<1x1xf32, #tpu.memory_space<vmem>>, %arg4: memref<1x1xf32, #tpu.memory_space<vmem>>, %arg5: memref<8x1xf32, #tpu.memory_space<vmem>>) attributes {dimension_semantics = [#tpu.dimension_semantics<parallel>], iteration_bounds = array<i64: 1>, scalar_prefetch = 0 : i64, scratch_operands = 0 : i64, tpu.core_type = #tpu.core_type<tc>, window_params = [{transform_indices = @transform_0, window_bounds = array<i64: 8, 128>}, {pipeline_mode = #tpu.pipeline_mode<synchronous>, transform_indices = @transform_1, window_bounds = array<i64: 128, 1>}, {pipeline_mode = #tpu.pipeline_mode<synchronous>, transform_indices = @transform_2, window_bounds = array<i64: 1, 1>}, {pipeline_mode = #tpu.pipeline_mode<synchronous>, transform_indices = @transform_3, window_bounds = array<i64: 1, 1>}, {transform_indices = @transform_4, window_bounds = array<i64: 8, 1>}]} {
    %c0 = arith.constant 0 : index
    %c0_0 = arith.constant 0 : index
    %0 = vector.load %arg1[%c0, %c0_0] : memref<8x128xbf16, #tpu.memory_space<vmem>>, vector<8x128xbf16>
    %c0_1 = arith.constant 0 : index
    %c0_2 = arith.constant 0 : index
    %1 = vector.load %arg2[%c0_1, %c0_2] : memref<128x1xbf16, #tpu.memory_space<vmem>>, vector<128x1xbf16>
    %cst = arith.constant dense<0.000000e+00> : vector<8x1xf32>
    %2 = tpu.matmul %0, %1, %cst {dimension_numbers = #tpu.dot_dimension_numbers<[1], [0], [0], [1], [0, 0, 1, 1], [], []>} : vector<8x128xbf16>, vector<128x1xbf16>, vector<8x1xf32> -> vector<8x1xf32>
    %c0_3 = arith.constant 0 : index
    %c0_4 = arith.constant 0 : index
    %3 = vector.load %arg3[%c0_3, %c0_4] : memref<1x1xf32, #tpu.memory_space<vmem>>, vector<1x1xf32>
    %4 = vector.broadcast %3 : vector<1x1xf32> to vector<8x1xf32>
    %5 = arith.mulf %2, %4 : vector<8x1xf32>
    %c0_5 = arith.constant 0 : index
    %c0_6 = arith.constant 0 : index
    %6 = vector.load %arg4[%c0_5, %c0_6] : memref<1x1xf32, #tpu.memory_space<vmem>>, vector<1x1xf32>
    %7 = vector.broadcast %6 : vector<1x1xf32> to vector<8x1xf32>
    %8 = arith.addf %5, %7 : vector<8x1xf32>
    %9 = arith.negf %8 : vector<8x1xf32>
    %10 = math.exp %9 : vector<8x1xf32>
    %cst_7 = arith.constant 1.000000e+00 : f32
    %11 = vector.broadcast %cst_7 : f32 to vector<8x1xf32>
    %12 = arith.addf %11, %10 : vector<8x1xf32>
    %13 = arith.divf %11, %12 : vector<8x1xf32>
    %c0_8 = arith.constant 0 : index
    %c0_9 = arith.constant 0 : index
    %14 = vector.load %arg5[%c0_8, %c0_9] : memref<8x1xf32, #tpu.memory_space<vmem>>, vector<8x1xf32>
    tpu.vector_store %arg5[%c0_8, %c0_9], %13 {strides = array<i32>} : memref<8x1xf32, #tpu.memory_space<vmem>>, vector<8x1xf32>,
    return
  }
  func.func @transform_0(%arg0: i32) -> (i32, i32) {
    %c0_i32 = arith.constant 0 : i32
    %c0_i32_0 = arith.constant 0 : i32
    return %arg0, %c0_i32 : i32, i32
  }
  func.func @transform_1(%arg0: i32) -> (i32, i32) {
    %c0_i32 = arith.constant 0 : i32
    %c0_i32_0 = arith.constant 0 : i32
    %c0_i32_1 = arith.constant 0 : i32
    return %c0_i32, %c0_i32_0 : i32, i32
  }
  func.func @transform_2(%arg0: i32) -> (i32, i32) {
    %c0_i32 = arith.constant 0 : i32
    %c0_i32_0 = arith.constant 0 : i32
    %c0_i32_1 = arith.constant 0 : i32
    return %c0_i32, %c0_i32_0 : i32, i32
  }
  func.func @transform_3(%arg0: i32) -> (i32, i32) {
    %c0_i32 = arith.constant 0 : i32
    %c0_i32_0 = arith.constant 0 : i32
    %c0_i32_1 = arith.constant 0 : i32
    return %c0_i32, %c0_i32_0 : i32, i32
  }
  func.func @transform_4(%arg0: i32) -> (i32, i32) {
    %c0_i32 = arith.constant 0 : i32
    %c0_i32_0 = arith.constant 0 : i32
    return %arg0, %c0_i32 : i32, i32
  }
}

</mosaic_0001>

<bundles_post_ra>
// kernel: tpu_custom_call.1
= control target key start
LH: loop header
LB: loop body
LE: loop exit
PB: predicated region body
PF: predicated region fallthrough
CT: control target
= control target key end

     0   :  { %v209_v0 = vmov 0.0   ;;  %vm210_vm0 = vmmov 0   ;;  %vm149_vm1 = vcmask 7168   ;;  %s272_s1 = inlined_call_operand.vmem [shape: bf16[128,1], index: 1, kind: input, shape index: {}]   ;;  %s273_s2 = inlined_call_operand.<no memory space> [shape: f32[1,1], index: 2, kind: input, shape index: {}]   ;;  %s274_s3 = inlined_call_operand.<no memory space> [shape: f32[1,1], index: 3, kind: input, shape index: {}]   ;;  %s275_s0 = inlined_call_operand.vmem [shape: bf16[8,128], index: 0, kind: input, shape index: {}]   ;;  %s276_s4 = inlined_call_operand.vmem [shape: f32[8,1], index: 4, kind: output, shape index: {}]  }
   0x1   :  { %175 = vmatprep.subr.bf16.mxu0 %v209_v0  ;;  %v197_v1 = vld [vmem:[%s272_s1] sm:$0xff]   ;;  %191 = vmatprep.mubr.msk.bf16.mxu0 %vm210_vm0, %v209_v0  ;;  %v9_v2 = vstv %s273_s2  ;;  %v11_v3 = vstv %s274_s3  ;;  %v198_v4 = vld [vmem:[%s272_s1 + $0x8] sm:$0xff]  }
   0x2   :  { %10 = vst [vmem:[#allocation2] sm:$0x1] %v9_v2  ;;  %176 = vmatpush3.bf16.msra.mxu0 %v197_v1  ;;  %12 = vst [vmem:[#allocation3] sm:$0x1] %v11_v3  ;;  %v199_v5 = vld [vmem:[%s272_s1 + $0x10] sm:$0xff]   ;;  %v200_v6 = vld [vmem:[%s272_s1 + $0x18] sm:$0xff]  }
   0x3   :  { %177 = vmatprep.subr.bf16.mxu0 %v209_v0  ;;  %v201_v7 = vld [vmem:[%s272_s1 + $0x20] sm:$0xff]   ;;  %v202_v8 = vld [vmem:[%s272_s1 + $0x28] sm:$0xff]   ;;  %v203_v9 = vld [vmem:[%s272_s1 + $0x30] sm:$0xff]  }
   0x4   :  { %v204_v10 = vld [vmem:[%s272_s1 + $0x38] sm:$0xff]   ;;  %v22_v11 = vld [vmem:[%s275_s0] sm:$0xf] }
   0x6   :  { %178 = vmatpush3.bf16.msra.mxu0 %v198_v4 }
   0x7   :  { %179 = vmatprep.subr.bf16.mxu0 %v209_v0 }
   0x9   :  { %v163_v12 = vld [vmem:[#allocation2] ss:$0 sm:$0xff]  ;;  %v164_v14 = vld [vmem:[#allocation3] ss:$0 sm:$0xff] }
   0xa   :  { %180 = vmatpush3.bf16.msra.mxu0 %v199_v5 }
   0xb   :  { %181 = vmatprep.subr.bf16.mxu0 %v209_v0 }
   0xe   :  { %182 = vmatpush3.bf16.msra.mxu0 %v200_v6 }
   0xf   :  { %183 = vmatprep.subr.bf16.mxu0 %v209_v0 }
  0x12   :  { %184 = vmatpush3.bf16.msra.mxu0 %v201_v7 }
  0x13   :  { %185 = vmatprep.subr.bf16.mxu0 %v209_v0 }
  0x16   :  { %186 = vmatpush3.bf16.msra.mxu0 %v202_v8 }
  0x17   :  { %187 = vmatprep.subr.bf16.mxu0 %v209_v0 }
  0x1a   :  { %188 = vmatpush3.bf16.msra.mxu0 %v203_v9 }
  0x1b   :  { %189 = vmatprep.subr.bf16.mxu0 %v209_v0 }
  0x1e   :  { %190 = vmatpush3.bf16.msra.mxu0 %v204_v10 }
  0x21   :  { %192 = vmatmul.mubr.bf16.vlgmr.msra.gmra.mrb[0].mxu0 %v22_v11 }
  0xf4   :  { %v121_v13 = vpop.f32.mrb[0].mxu0 }
  0xf5   :  { %v134_v15 = vmul.f32 %v163_v12, %v121_v13  ;;  %v193_v16 = vpop.f32.mrb[1].mxu0 }
  0xf6   :  { %v124_v17 = vpop.f32.mrb[2].mxu0 }
  0xf7   :  { %v142_v18 = vadd.f32 %v164_v14, %v134_v15  ;;  %v194_v19 = vpop.f32.mrb[3].mxu0 }
  0xf9   :  { %v165_v20 = vmul.f32 -1.442695, %v142_v18 }
  0xfb   :  { %205 = vpow2.f32 %v165_v20 }
 0x105   :  { %v206_v21 = vpop.eup %205 }
 0x106   :  { %v146_v22 = vadd.f32 1.0, %v206_v21 }
 0x108   :  { %207 = vrcp.f32 %v146_v22 }
 0x112   :  { %v208_v23 = vpop.eup %207 }
 0x113   :  { %150 = vst.msk [vmem:[%s276_s4] sm:$0xff] %vm149_vm1, %v208_v23 }

</bundles_post_ra>
